<compile_context>
chip_gen: v7x
topology: tpu7x:2x2x1
jax: 0.10.0
libtpu: 0.0.40
codegen_flags: <defaults>
</compile_context>

<pallas_src>
import functools

import jax
import jax.numpy as jnp
from jax.experimental import pallas as pl
from jax.experimental.pallas import tpu as pltpu

HIDDEN = 31  # fixed by the module: nn.Linear(in_size, 31)


def _round_up(x, m):
    return ((x + m - 1) // m) * m


def _num_tensorcores():
    """Best-effort TensorCore-per-device count (2 on v4/v5p/v7x, else 1)."""
    try:
        d = jax.devices()[0]
        nc = getattr(d, "num_cores", None)
        if nc:
            return int(nc)
        kind = str(getattr(d, "device_kind", "")).lower()
        if any(tag in kind for tag in ("v4", "v5p", "v7")):
            return 2
    except Exception:
        pass
    return 1


def _mlp_kernel(x_ref, w1_ref, b1_ref, w2_ref, b2_ref, o_ref):
    """Two-layer MLP (Linear -> ReLU -> Linear) for one batch tile."""
    # Layer 1: x @ W1 + b1, ReLU  (MXU matmul, f32 accumulation; VPU elementwise)
    h = jnp.dot(x_ref[...], w1_ref[...], preferred_element_type=jnp.float32)
    h = jnp.maximum(h + b1_ref[...], 0.0)

    # Layer 2: h @ W2 + b2
    y = jnp.dot(h, w2_ref[...], preferred_element_type=jnp.float32)
    o_ref[...] = (y + b2_ref[...]).astype(o_ref.dtype)


def _pick_tile_n(n, in_size, h_pad, out_size, x_bytes, num_cores, *,
                 max_tile=8192, tile_budget_bytes=32 << 20):
    """Pick a batch tile: as large as possible (multi-MiB x DMAs), VMEM-budgeted.

    Per-row VMEM cost: double-buffered x tile + double-buffered f32 out tile
    + f32 hidden/output intermediates. Weights are charged separately (tiny).
    """
    n8 = _round_up(max(n, 1), 8)
    bytes_per_row = (2 * in_size * x_bytes          # x tile, double-buffered
                     + 2 * out_size * 4             # out tile, double-buffered
                     + 2 * h_pad * 4)               # f32 intermediates headroom
    cap = max(8, (tile_budget_bytes // max(bytes_per_row, 1)) // 8 * 8)
    tile = min(max_tile, cap, n8)

    # On megacore chips (>= 2 TCs), make sure the "parallel" grid axis has at
    # least num_cores steps so both TensorCores get work. Single-TC chips
    # (v5e/v6e) keep the full tile: splitting there only adds step overhead.
    if num_cores >= 2 and n8 > 8 * num_cores:
        steps = -(-n8 // tile)
        if steps < num_cores:
            tile = max(8, _round_up(-(-n8 // num_cores), 8))
    return int(tile)


@functools.partial(jax.jit, static_argnames=("tile_n",))
def neuralnet_forward(x, w1, b1, w2, b2, *, tile_n=None):
    """Pallas forward pass.

    x:  (N, in_size)            (f32 or bf16)
    w1: (in_size, 31), b1: (1, 31)
    w2: (31, out_size), b2: (1, out_size)
    returns: (N, out_size) float32
    """
    n, in_size = x.shape
    hidden = w1.shape[1]
    out_size = w2.shape[1]

    # Pad the hidden dim 31 -> 32 (zero column in W1/b1, zero row in W2).
    # ReLU(x @ 0 + 0) = 0 and the zero row of W2 contributes 0 -> exact.
    h_pad = _round_up(hidden, 8)
    if h_pad != hidden:
        w1 = jnp.pad(w1, ((0, 0), (0, h_pad - hidden)))
        b1 = jnp.pad(b1, ((0, 0), (0, h_pad - hidden)))
        w2 = jnp.pad(w2, ((0, h_pad - hidden), (0, 0)))

    num_cores = _num_tensorcores()
    x_bytes = jnp.dtype(x.dtype).itemsize
    if tile_n is None:
        tile_n = _pick_tile_n(n, in_size, h_pad, out_size, x_bytes, num_cores)
    tile_n = _round_up(int(tile_n), 8)

    # Ragged batch: rely on Pallas partial-final-block handling (no jnp.pad of
    # x, which would add a full extra HBM copy). Safe here because each output
    # row depends only on its own input row; garbage tail rows are clipped on
    # output writeback.
    grid = (pl.cdiv(n, tile_n),)

    # Derive the scoped-VMEM limit from the actual footprint + headroom,
    # kept under v7x's 64 MiB physical VMEM per TensorCore.
    params_bytes = 2 * 4 * (in_size * h_pad + h_pad + h_pad * out_size + out_size)
    x_tile_bytes = 2 * tile_n * in_size * x_bytes
    out_tile_bytes = 2 * tile_n * out_size * 4
    interm_bytes = 2 * tile_n * h_pad * 4
    needed = params_bytes + x_tile_bytes + out_tile_bytes + interm_bytes
    vmem_limit = int(min(56 << 20, max(needed + (8 << 20), 24 << 20)))

    out = pl.pallas_call(
        _mlp_kernel,
        out_shape=jax.ShapeDtypeStruct((n, out_size), jnp.float32),
        grid_spec=pltpu.PrefetchScalarGridSpec(
            num_scalar_prefetch=0,
            grid=grid,
            in_specs=[
                # batch tile of activations (streamed; dominant HBM traffic)
                pl.BlockSpec((tile_n, in_size), lambda i: (i, 0)),
                # parameters: full blocks, constant index_map -> VMEM-resident
                pl.BlockSpec((in_size, h_pad), lambda i: (0, 0)),
                pl.BlockSpec((1, h_pad), lambda i: (0, 0)),
                pl.BlockSpec((h_pad, out_size), lambda i: (0, 0)),
                pl.BlockSpec((1, out_size), lambda i: (0, 0)),
            ],
            out_specs=pl.BlockSpec((tile_n, out_size), lambda i: (i, 0)),
        ),
        compiler_params=pltpu.CompilerParams(
            dimension_semantics=("parallel",),
            vmem_limit_bytes=vmem_limit,
        ),
    )(x, w1, b1, w2, b2)

    return out


def init_params(key, in_size, out_size):
    """Deterministic init mimicking torch.nn.Linear default (U[-1/sqrt(fan_in), +])."""
    k1, k2, k3, k4 = jax.random.split(key, 4)
    bound1 = 1.0 / jnp.sqrt(in_size)
    bound2 = 1.0 / jnp.sqrt(HIDDEN)
    w1 = jax.random.uniform(k1, (in_size, HIDDEN), jnp.float32, -bound1, bound1)
    b1 = jax.random.uniform(k2, (1, HIDDEN), jnp.float32, -bound1, bound1)
    w2 = jax.random.uniform(k3, (HIDDEN, out_size), jnp.float32, -bound2, bound2)
    b2 = jax.random.uniform(k4, (1, out_size), jnp.float32, -bound2, bound2)
    return w1, b1, w2, b2


if __name__ == "__main__":
    # Small shapes consistent with forward(x: (N, in_size)) -> (N, out_size).
    # N=50 is deliberately not a multiple of 8 to exercise the ragged-batch
    # (partial last block) path.
    N, IN_SIZE, OUT_SIZE = 50, 128, 4

    key = jax.random.PRNGKey(0)
    kx, kp = jax.random.split(key)
    x = jax.random.normal(kx, (N, IN_SIZE), dtype=jnp.float32)
    w1, b1, w2, b2 = init_params(kp, IN_SIZE, OUT_SIZE)

    y = neuralnet_forward(x, w1, b1, w2, b2)
    y = jax.block_until_ready(y)

    # Pure-JAX reference check of the same forward semantics. (MXU f32 matmul
    # is multi-pass bf16 with f32 accumulation on both paths; tolerance is
    # kept modest rather than exact-f32.)
    ref = jnp.maximum(x @ w1 + b1, 0.0) @ w2 + b2
    assert y.shape == (N, OUT_SIZE)
    assert jnp.allclose(y, ref, atol=2e-5, rtol=2e-5)

    # TODO(synk): step()/loss_fn/SGD training loop not translated (forward-only kernel).
    print("KERNEL_OK")
</pallas_src>

<mosaic_0001>
module attributes {stable_mosaic.version = 11 : i64} {
  func.func @_mlp_kernel(%arg0: i32, %arg1: memref<56x128xf32, #tpu.memory_space<vmem>>, %arg2: memref<128x32xf32, #tpu.memory_space<vmem>>, %arg3: memref<1x32xf32, #tpu.memory_space<vmem>>, %arg4: memref<32x4xf32, #tpu.memory_space<vmem>>, %arg5: memref<1x4xf32, #tpu.memory_space<vmem>>, %arg6: memref<56x4xf32, #tpu.memory_space<vmem>>) attributes {dimension_semantics = [#tpu.dimension_semantics<parallel>], iteration_bounds = array<i64: 1>, scalar_prefetch = 0 : i64, scratch_operands = 0 : i64, tpu.core_type = #tpu.core_type<tc>, window_params = [{transform_indices = @transform_0, window_bounds = array<i64: 56, 128>}, {pipeline_mode = #tpu.pipeline_mode<synchronous>, transform_indices = @transform_1, window_bounds = array<i64: 128, 32>}, {pipeline_mode = #tpu.pipeline_mode<synchronous>, transform_indices = @transform_2, window_bounds = array<i64: 1, 32>}, {pipeline_mode = #tpu.pipeline_mode<synchronous>, transform_indices = @transform_3, window_bounds = array<i64: 32, 4>}, {pipeline_mode = #tpu.pipeline_mode<synchronous>, transform_indices = @transform_4, window_bounds = array<i64: 1, 4>}, {transform_indices = @transform_5, window_bounds = array<i64: 56, 4>}]} {
    %c0 = arith.constant 0 : index
    %c0_0 = arith.constant 0 : index
    %0 = vector.load %arg1[%c0, %c0_0] : memref<56x128xf32, #tpu.memory_space<vmem>>, vector<56x128xf32>
    %c0_1 = arith.constant 0 : index
    %c0_2 = arith.constant 0 : index
    %1 = vector.load %arg2[%c0_1, %c0_2] : memref<128x32xf32, #tpu.memory_space<vmem>>, vector<128x32xf32>
    %cst = arith.constant dense<0.000000e+00> : vector<56x32xf32>
    %2 = tpu.matmul %0, %1, %cst {dimension_numbers = #tpu.dot_dimension_numbers<[1], [0], [0], [1], [0, 0, 1, 1], [], []>} : vector<56x128xf32>, vector<128x32xf32>, vector<56x32xf32> -> vector<56x32xf32>
    %c0_3 = arith.constant 0 : index
    %c0_4 = arith.constant 0 : index
    %3 = vector.load %arg3[%c0_3, %c0_4] : memref<1x32xf32, #tpu.memory_space<vmem>>, vector<1x32xf32>
    %4 = vector.broadcast %3 : vector<1x32xf32> to vector<56x32xf32>
    %5 = arith.addf %2, %4 : vector<56x32xf32>
    %cst_5 = arith.constant 0.000000e+00 : f32
    %6 = vector.broadcast %cst_5 : f32 to vector<56x32xf32>
    %7 = arith.maximumf %5, %6 : vector<56x32xf32>
    %c0_6 = arith.constant 0 : index
    %c0_7 = arith.constant 0 : index
    %8 = vector.load %arg4[%c0_6, %c0_7] : memref<32x4xf32, #tpu.memory_space<vmem>>, vector<32x4xf32>
    %cst_8 = arith.constant dense<0.000000e+00> : vector<56x4xf32>
    %9 = tpu.matmul %7, %8, %cst_8 {dimension_numbers = #tpu.dot_dimension_numbers<[1], [0], [0], [1], [0, 0, 1, 1], [], []>} : vector<56x32xf32>, vector<32x4xf32>, vector<56x4xf32> -> vector<56x4xf32>
    %c0_9 = arith.constant 0 : index
    %c0_10 = arith.constant 0 : index
    %10 = vector.load %arg5[%c0_9, %c0_10] : memref<1x4xf32, #tpu.memory_space<vmem>>, vector<1x4xf32>
    %11 = vector.broadcast %10 : vector<1x4xf32> to vector<56x4xf32>
    %12 = arith.addf %9, %11 : vector<56x4xf32>
    %c0_11 = arith.constant 0 : index
    %c0_12 = arith.constant 0 : index
    %13 = vector.load %arg6[%c0_11, %c0_12] : memref<56x4xf32, #tpu.memory_space<vmem>>, vector<56x4xf32>
    tpu.vector_store %arg6[%c0_11, %c0_12], %12 {strides = array<i32>} : memref<56x4xf32, #tpu.memory_space<vmem>>, vector<56x4xf32>,
    return
  }
  func.func @transform_0(%arg0: i32) -> (i32, i32) {
    %c0_i32 = arith.constant 0 : i32
    %c0_i32_0 = arith.constant 0 : i32
    return %arg0, %c0_i32 : i32, i32
  }
  func.func @transform_1(%arg0: i32) -> (i32, i32) {
    %c0_i32 = arith.constant 0 : i32
    %c0_i32_0 = arith.constant 0 : i32
    %c0_i32_1 = arith.constant 0 : i32
    return %c0_i32, %c0_i32_0 : i32, i32
  }
  func.func @transform_2(%arg0: i32) -> (i32, i32) {
    %c0_i32 = arith.constant 0 : i32
    %c0_i32_0 = arith.constant 0 : i32
    %c0_i32_1 = arith.constant 0 : i32
    return %c0_i32, %c0_i32_0 : i32, i32
  }
  func.func @transform_3(%arg0: i32) -> (i32, i32) {
    %c0_i32 = arith.constant 0 : i32
    %c0_i32_0 = arith.constant 0 : i32
    %c0_i32_1 = arith.constant 0 : i32
    return %c0_i32, %c0_i32_0 : i32, i32
  }
  func.func @transform_4(%arg0: i32) -> (i32, i32) {
    %c0_i32 = arith.constant 0 : i32
    %c0_i32_0 = arith.constant 0 : i32
    %c0_i32_1 = arith.constant 0 : i32
    return %c0_i32, %c0_i32_0 : i32, i32
  }
  func.func @transform_5(%arg0: i32) -> (i32, i32) {
    %c0_i32 = arith.constant 0 : i32
    %c0_i32_0 = arith.constant 0 : i32
    return %arg0, %c0_i32 : i32, i32
  }
}

</mosaic_0001>

<bundles_post_ra>
// kernel: neuralnet_forward.1
= control target key start
LH: loop header
LB: loop body
LE: loop exit
PB: predicated region body
PF: predicated region fallthrough
CT: control target
= control target key end

     0   :  { %v460_v0 = vmov 0.0|0.0   ;;  %vm461_vm0 = vmmov 0   ;;  %v462_v4 = vmov 0.0   ;;  %vm168_vm1 = vcmask 261120   ;;  %s643_s1 = inlined_call_operand.vmem [shape: f32[128,32], index: 1, kind: input, shape index: {}]   ;;  %s644_s3 = inlined_call_operand.vmem [shape: f32[32,4], index: 3, kind: input, shape index: {}]   ;;  %s645_s0 = inlined_call_operand.vmem [shape: f32[50,128], index: 0, kind: input, shape index: {}]   ;;  %s646_s2 = inlined_call_operand.vmem [shape: f32[1,32], index: 2, kind: input, shape index: {}]   ;;  %s647_s4 = inlined_call_operand.vmem [shape: f32[1,4], index: 4, kind: input, shape index: {}]   ;;  %s648_s5 = inlined_call_operand.vmem [shape: f32[50,4], index: 5, kind: output, shape index: {}]  }
   0x1   :  { %427 = vmatprep.subr.bf16.mxu0 %v460_v0  ;;  %v27_v1 = vld [vmem:[%s643_s1] sm:$0xff]  ;;  %v28_v2 = vld [vmem:[%s643_s1 + $0x8] sm:$0xff]  ;;  %v29_v3 = vld [vmem:[%s643_s1 + $0x10] sm:$0xff]  ;;  %377 = vmatprep.mubr.msk.f32.mxu0 %vm461_vm0, %v462_v4  ;;  %vm290_vm2 = vcmask 31744  }
   0x2   :  { %v428_v5 = vpack.c.bf16 %v28_v2, %v27_v1  ;;  %v30_v6 = vld [vmem:[%s643_s1 + $0x18] sm:$0xff]  ;;  %451 = vmatprep.subr.bf16.mxu1 %v460_v0  ;;  %406 = vmatprep.mubr.msk.f32.mxu1 %vm461_vm0, %v462_v4  ;;  %v31_v8 = vld [vmem:[%s643_s1 + $0x20] sm:$0xff]  ;;  %v32_v9 = vld [vmem:[%s643_s1 + $0x28] sm:$0xff] }
   0x3   :  { %v431_v7 = vpack.c.bf16 %v30_v6, %v29_v3  ;;  %v434_v10 = vpack.c.bf16 %v32_v9, %v31_v8  ;;  %v157_v11 = vld [vmem:[%s644_s3] sm:$0xff]  ;;  %v33_v12 = vld [vmem:[%s643_s1 + $0x30] sm:$0xff]  ;;  %v34_v13 = vld [vmem:[%s643_s1 + $0x38] sm:$0xff] }
   0x4   :  { %429 = vmatpush3.bf16.msra.mxu0 %v428_v5  ;;  %v158_v14 = vld [vmem:[%s644_s3 + $0x8] sm:$0xff]  ;;  %v437_v16 = vpack.c.bf16 %v34_v13, %v33_v12  ;;  %v35_v17 = vld [vmem:[%s643_s1 + $0x40] sm:$0xff]  ;;  %v37_v20 = vld [vmem:[%s643_s1 + $0x50] sm:$0xff] }
   0x5   :  { %430 = vmatprep.subr.bf16.mxu0 %v460_v0  ;;  %v452_v15 = vpack.c.bf16 %v158_v14, %v157_v11  ;;  %v36_v18 = vld [vmem:[%s643_s1 + $0x48] sm:$0xff]  ;;  %v38_v21 = vld [vmem:[%s643_s1 + $0x58] sm:$0xff]  ;;  %v39_v23 = vld [vmem:[%s643_s1 + $0x60] sm:$0xff] }
   0x6   :  { %v440_v19 = vpack.c.bf16 %v36_v18, %v35_v17  ;;  %v443_v22 = vpack.c.bf16 %v38_v21, %v37_v20  ;;  %v40_v24 = vld [vmem:[%s643_s1 + $0x68] sm:$0xff]  ;;  %v41_v26 = vld [vmem:[%s643_s1 + $0x70] sm:$0xff]  ;;  %v42_v27 = vld [vmem:[%s643_s1 + $0x78] sm:$0xff] }
   0x7   :  { %453 = vmatpush3.bf16.msra.mxu1 %v452_v15  ;;  %v446_v25 = vpack.c.bf16 %v40_v24, %v39_v23  ;;  %v449_v28 = vpack.c.bf16 %v42_v27, %v41_v26  ;;  %v20_v29 = vld [vmem:[%s645_s0] sm:$0xff]  ;;  %v21_v30 = vld [vmem:[%s645_s0 + $0x8] sm:$0xff]  ;;  %v22_v31 = vld [vmem:[%s645_s0 + $0x10] sm:$0xff] }
   0x8   :  { %432 = vmatpush3.bf16.msra.mxu0 %v431_v7  ;;  %454 = vmatprep.subr.bf16.mxu1 %v460_v0  ;;  %v23_v32 = vld [vmem:[%s645_s0 + $0x18] sm:$0xff]  ;;  %v24_v33 = vld [vmem:[%s645_s0 + $0x20] sm:$0xff]  ;;  %v25_v34 = vld [vmem:[%s645_s0 + $0x28] sm:$0xff] }
   0x9   :  { %433 = vmatprep.subr.bf16.mxu0 %v460_v0  ;;  %v26_v35 = vld [vmem:[%s645_s0 + $0x30] sm:$0xff]  ;;  %v160_v37 = vld [vmem:[%s644_s3 + $0x18] sm:$0xff]  ;;  %v302_v39 = vld [vmem:[%s646_s2] ss:$0 sm:$0xff] }
   0xa   :  { %v159_v36 = vld [vmem:[%s644_s3 + $0x10] sm:$0xff]  ;;  %v303_v5 = vld [vmem:[%s647_s4] ss:$0 sm:$0xff] }
   0xb   :  { %v455_v38 = vpack.c.bf16 %v160_v37, %v159_v36 }
   0xc   :  { %435 = vmatpush3.bf16.msra.mxu0 %v434_v10 }
   0xd   :  { %436 = vmatprep.subr.bf16.mxu0 %v460_v0  ;;  %456 = vmatpush3.bf16.msra.mxu1 %v455_v38 }
  0x10   :  { %438 = vmatpush3.bf16.msra.mxu0 %v437_v16 }
  0x11   :  { %439 = vmatprep.subr.bf16.mxu0 %v460_v0 }
  0x14   :  { %441 = vmatpush3.bf16.msra.mxu0 %v440_v19 }
  0x15   :  { %442 = vmatprep.subr.bf16.mxu0 %v460_v0 }
  0x18   :  { %444 = vmatpush3.bf16.msra.mxu0 %v443_v22 }
  0x19   :  { %445 = vmatprep.subr.bf16.mxu0 %v460_v0 }
  0x1c   :  { %447 = vmatpush3.bf16.msra.mxu0 %v446_v25 }
  0x1d   :  { %448 = vmatprep.subr.bf16.mxu0 %v460_v0 }
  0x20   :  { %450 = vmatpush3.bf16.msra.mxu0 %v449_v28 }
  0x23   :  { %378 = vmatmul.mubr.f32.vlgmr.msra.gmra.mrb[0].mxu0 %v20_v29 }
  0x24   :  { %380 = vmatprep.mubr.msk.f32.mxu0 %vm461_vm0, %v462_v4 }
  0x27   :  { %381 = vmatmul.mubr.f32.gmra.mrb[2].mxu0 %v21_v30 }
  0x28   :  { %383 = vmatprep.mubr.msk.f32.mxu0 %vm461_vm0, %v462_v4 }
  0x2b   :  { %384 = vmatmul.mubr.f32.gmra.mrb[4].mxu0 %v22_v31 }
  0x2c   :  { %386 = vmatprep.mubr.msk.f32.mxu0 %vm461_vm0, %v462_v4 }
  0x2f   :  { %387 = vmatmul.mubr.f32.gmra.mrb[6].mxu0 %v23_v32 }
  0x30   :  { %389 = vmatprep.mubr.msk.f32.mxu0 %vm461_vm0, %v462_v4 }
  0x33   :  { %390 = vmatmul.mubr.f32.gmra.mrb[8].mxu0 %v24_v33 }
  0x34   :  { %392 = vmatprep.mubr.msk.f32.mxu0 %vm461_vm0, %v462_v4 }
  0x37   :  { %393 = vmatmul.mubr.f32.gmra.mrb[10].mxu0 %v25_v34 }
  0x38   :  { %395 = vmatprep.mubr.msk.f32.mxu0 %vm461_vm0, %v462_v4 }
  0x3b   :  { %396 = vmatmul.mubr.f32.gmra.mrb[12].mxu0 %v26_v35 }
  0xf6   :  { %v116_v40 = vpop.f32.mrb[0].mxu0 }
  0xf7   :  { %v117_v41 = vadd.f32 %v302_v39, %v116_v40  ;;  %v379_v42 = vpop.f32.mrb[1].mxu0 }
  0xf9   :  { %v150_v43 = vmax.f32 %v117_v41, 0.0 }
  0xfa   :  { %v121_v44 = vpop.f32.mrb[2].mxu0 }
  0xfb   :  { %v122_v45 = vadd.f32 %v302_v39, %v121_v44  ;;  %v382_v46 = vpop.f32.mrb[3].mxu0  ;;  %407 = vmatmul.mubr.msk.f32.vlgmr.msra.gmra.mrb[0].mxu1 %vm168_vm1, %v150_v43 }
  0xfc   :  { %409 = vmatprep.mubr.msk.f32.mxu1 %vm461_vm0, %v462_v4 }
  0xfd   :  { %v151_v47 = vmax.f32 %v122_v45, 0.0 }
  0xfe   :  { %v126_v48 = vpop.f32.mrb[4].mxu0 }
  0xff   :  { %v127_v49 = vadd.f32 %v302_v39, %v126_v48  ;;  %v385_v50 = vpop.f32.mrb[5].mxu0  ;;  %410 = vmatmul.mubr.msk.f32.gmra.mrb[2].mxu1 %vm168_vm1, %v151_v47 }
 0x100   :  { %412 = vmatprep.mubr.msk.f32.mxu1 %vm461_vm0, %v462_v4 }
 0x101   :  { %v152_v51 = vmax.f32 %v127_v49, 0.0 }
 0x102   :  { %v131_v52 = vpop.f32.mrb[6].mxu0 }
 0x103   :  { %v132_v53 = vadd.f32 %v302_v39, %v131_v52  ;;  %v388_v54 = vpop.f32.mrb[7].mxu0  ;;  %413 = vmatmul.mubr.msk.f32.gmra.mrb[4].mxu1 %vm168_vm1, %v152_v51 }
 0x104   :  { %415 = vmatprep.mubr.msk.f32.mxu1 %vm461_vm0, %v462_v4 }
 0x105   :  { %v153_v55 = vmax.f32 %v132_v53, 0.0 }
 0x106   :  { %v136_v56 = vpop.f32.mrb[8].mxu0 }
 0x107   :  { %v137_v57 = vadd.f32 %v302_v39, %v136_v56  ;;  %v391_v58 = vpop.f32.mrb[9].mxu0  ;;  %416 = vmatmul.mubr.msk.f32.gmra.mrb[6].mxu1 %vm168_vm1, %v153_v55 }
 0x108   :  { %418 = vmatprep.mubr.msk.f32.mxu1 %vm461_vm0, %v462_v4 }
 0x109   :  { %v154_v59 = vmax.f32 %v137_v57, 0.0 }
 0x10a   :  { %v141_v60 = vpop.f32.mrb[10].mxu0 }
 0x10b   :  { %v142_v61 = vadd.f32 %v302_v39, %v141_v60  ;;  %v394_v62 = vpop.f32.mrb[11].mxu0  ;;  %419 = vmatmul.mubr.msk.f32.gmra.mrb[8].mxu1 %vm168_vm1, %v154_v59 }
 0x10c   :  { %421 = vmatprep.mubr.msk.f32.mxu1 %vm461_vm0, %v462_v4 }
 0x10d   :  { %v155_v63 = vmax.f32 %v142_v61, 0.0 }
 0x10e   :  { %v146_v0 = vpop.f32.mrb[12].mxu0 }
 0x10f   :  { %v147_v1 = vadd.f32 %v302_v39, %v146_v0  ;;  %v397_v2 = vpop.f32.mrb[13].mxu0  ;;  %422 = vmatmul.mubr.msk.f32.gmra.mrb[10].mxu1 %vm168_vm1, %v155_v63 }
 0x110   :  { %424 = vmatprep.mubr.msk.f32.mxu1 %vm461_vm0, %v462_v4 }
 0x111   :  { %v156_v3 = vmax.f32 %v147_v1, 0.0 }
 0x113   :  { %425 = vmatmul.mubr.msk.f32.gmra.mrb[12].mxu1 %vm168_vm1, %v156_v3 }
 0x1ce   :  { %v256_v6 = vpop.f32.mrb[0].mxu1 }
 0x1cf   :  { %v257_v7 = vadd.f32 %v303_v5, %v256_v6  ;;  %v408_v8 = vpop.f32.mrb[1].mxu1 }
 0x1d1   :  { %291 = vst.msk [vmem:[%s648_s5] sm:$0xff] %vm290_vm2, %v257_v7 }
 0x1d2   :  { %v261_v9 = vpop.f32.mrb[2].mxu1 }
 0x1d3   :  { %v262_v10 = vadd.f32 %v303_v5, %v261_v9  ;;  %v411_v11 = vpop.f32.mrb[3].mxu1 }
 0x1d5   :  { %292 = vst.msk [vmem:[%s648_s5 + $0x8] sm:$0xff] %vm290_vm2, %v262_v10 }
 0x1d6   :  { %v266_v4 = vpop.f32.mrb[4].mxu1 }
 0x1d7   :  { %v267_v12 = vadd.f32 %v303_v5, %v266_v4  ;;  %v414_v13 = vpop.f32.mrb[5].mxu1 }
 0x1d9   :  { %293 = vst.msk [vmem:[%s648_s5 + $0x10] sm:$0xff] %vm290_vm2, %v267_v12 }
 0x1da   :  { %v271_v14 = vpop.f32.mrb[6].mxu1 }
 0x1db   :  { %v272_v15 = vadd.f32 %v303_v5, %v271_v14  ;;  %v417_v16 = vpop.f32.mrb[7].mxu1 }
 0x1dd   :  { %294 = vst.msk [vmem:[%s648_s5 + $0x18] sm:$0xff] %vm290_vm2, %v272_v15 }
 0x1de   :  { %v276_v17 = vpop.f32.mrb[8].mxu1 }
 0x1df   :  { %v277_v18 = vadd.f32 %v303_v5, %v276_v17  ;;  %v420_v19 = vpop.f32.mrb[9].mxu1 }
 0x1e1   :  { %295 = vst.msk [vmem:[%s648_s5 + $0x20] sm:$0xff] %vm290_vm2, %v277_v18 }
 0x1e2   :  { %v281_v20 = vpop.f32.mrb[10].mxu1 }
 0x1e3   :  { %v282_v21 = vadd.f32 %v303_v5, %v281_v20  ;;  %v423_v22 = vpop.f32.mrb[11].mxu1 }
 0x1e5   :  { %296 = vst.msk [vmem:[%s648_s5 + $0x28] sm:$0xff] %vm290_vm2, %v282_v21 }
 0x1e6   :  { %v286_v23 = vpop.f32.mrb[12].mxu1 }
 0x1e7   :  { %v287_v24 = vadd.f32 %v303_v5, %v286_v23  ;;  %v426_v25 = vpop.f32.mrb[13].mxu1 }
 0x1e9   :  { %297 = vst.msk [vmem:[%s648_s5 + $0x30] sm:$0xff] %vm290_vm2, %v287_v24 }

</bundles_post_ra>
